<compile_context>
chip_gen: v5e
topology: v5e:2x2
jax: 0.10.0
libtpu: 0.0.40
codegen_flags: <defaults>
</compile_context>

<pallas_src>
import functools

import jax
import jax.numpy as jnp
from jax.experimental import pallas as pl
from jax.experimental.pallas import tpu as pltpu


# ---------------------------------------------------------------------------
# Synthetic "solution" config (mirrors the fields the PyTorch module reads).
# ---------------------------------------------------------------------------
INPUT_SIZE = 16
HIDDEN_SIZE = 32
OUTPUT_SIZE = 8
LAYERS_NUMBER = 3
DO_BATCH_NORM = True
ACTIVATION_HIDDEN = "relu"
ACTIVATION_OUTPUT = "sigmoid"
BN_EPS = 1e-5
LANE = 128  # pad every feature dim to the 128-lane vreg width


# ---------------------------------------------------------------------------
# Kernel
# ---------------------------------------------------------------------------
def _activation_in_kernel(y, act):
    if act == "relu":
        return jnp.maximum(y, 0.0)
    elif act == "sigmoid":
        # Exact sigmoid: exp runs on the EUP slot; the single full-precision VPU
        # divide on one [8,128] vreg is fully hidden under fixed overhead.
        return 1.0 / (1.0 + jnp.exp(-y))
    elif act == "tanh":
        return jnp.tanh(y)
    elif act == "linear":
        return y
    raise ValueError(f"unknown activation {act}")


def fused_mlp_kernel(x_ref, w_ref, v_ref, o_ref, *, do_bn, acts):
    """Whole MLP stack fused.

    x_ref: [N, LANE] f32 activations (lane-padded with exact zeros).
    w_ref: [L, LANE, LANE] bf16 stacked weights (zero-padded rows/cols).
    v_ref: [L, 2, LANE] f32 stacked (gamma, beta) when do_bn, else [L, 1, LANE]
           stacked bias.
    o_ref: [N, LANE] f32 output.
    Activations never leave VMEM between layers.
    """
    y = x_ref[...]                                  # [N, LANE] f32
    inv_n = 1.0 / x_ref.shape[0]                    # static
    n_layers = w_ref.shape[0]

    for l in range(n_layers):                       # static unroll (tiny L)
        # Single bf16 x bf16 MXU pass per layer, f32 accumulation.
        y = jnp.dot(y.astype(w_ref.dtype), w_ref[l],
                    preferred_element_type=jnp.float32)

        if do_bn:
            # Linear bias dropped: BN's mean subtraction cancels it exactly.
            # One-pass stats var = E[y^2] - mean^2 keeps the two XLU reductions
            # independent (no chained second pass). The clamp guards against
            # cancellation when |mean| >> std; fine at these activation scales.
            mean = jnp.sum(y, axis=0, keepdims=True) * inv_n          # [1, LANE]
            mean_sq = jnp.sum(y * y, axis=0, keepdims=True) * inv_n   # [1, LANE]
            var = jnp.maximum(mean_sq - mean * mean, 0.0)

            gamma = v_ref[l, 0:1, :]                                  # [1, LANE]
            beta = v_ref[l, 1:2, :]                                   # [1, LANE]
            # Folded affine: extra math stays on [1, LANE] rows; only two
            # full-width [N, LANE] VPU ops (mul, add) per layer.
            s = gamma * jax.lax.rsqrt(var + BN_EPS)                   # [1, LANE]
            t = beta - mean * s                                       # [1, LANE]
            y = y * s + t
        else:
            # No-BN path must keep the linear bias.
            y = y + v_ref[l, 0:1, :]

        y = _activation_in_kernel(y, acts[l])

    o_ref[...] = y.astype(o_ref.dtype)


# ---------------------------------------------------------------------------
# Wrapper (jit'ed: pad + kernel + slice are one dispatch)
# ---------------------------------------------------------------------------
@jax.jit
def solution_model_forward(x, w_all, v_all):
    """x: [N, INPUT_SIZE] -> [N, OUTPUT_SIZE], single fused pallas_call."""
    n = x.shape[0]

    # Lane padding of the input (padded lanes are exact zeros; they stay exactly
    # zero through every layer since padded weight rows/cols, gamma and beta are
    # all zero, so they never contaminate real output columns).
    x_pad = jnp.zeros((n, LANE), jnp.float32).at[:, : x.shape[1]].set(x)

    acts = tuple(
        ACTIVATION_OUTPUT if i == LAYERS_NUMBER - 1 else ACTIVATION_HIDDEN
        for i in range(LAYERS_NUMBER)
    )
    kernel = functools.partial(fused_mlp_kernel, do_bn=DO_BATCH_NORM, acts=acts)

    vmem = pl.BlockSpec(memory_space=pltpu.MemorySpace.VMEM)
    out_pad = pl.pallas_call(
        kernel,
        out_shape=jax.ShapeDtypeStruct((n, LANE), jnp.float32),
        in_specs=[vmem, vmem, vmem],
        out_specs=vmem,
    )(x_pad, w_all, v_all)

    return out_pad[:, :OUTPUT_SIZE]


# ---------------------------------------------------------------------------
# Parameter init (mirrors nn.Linear / nn.BatchNorm1d shapes) + lane packing
# ---------------------------------------------------------------------------
def init_params(key):
    dims_in = [INPUT_SIZE] + [HIDDEN_SIZE] * (LAYERS_NUMBER - 1)
    dims_out = [HIDDEN_SIZE] * (LAYERS_NUMBER - 1) + [OUTPUT_SIZE]
    raw = []
    for din, dout in zip(dims_in, dims_out):
        key, kw, kb, kg, kbt = jax.random.split(key, 5)
        bound = 1.0 / (din ** 0.5)
        w = jax.random.uniform(kw, (din, dout), jnp.float32, -bound, bound)
        b = jax.random.uniform(kb, (dout,), jnp.float32, -bound, bound)
        gamma = 1.0 + 0.1 * jax.random.normal(kg, (dout,), jnp.float32)
        beta = 0.1 * jax.random.normal(kbt, (dout,), jnp.float32)
        raw.append((w, b, gamma, beta))
    return raw


def pack_params(raw):
    """Zero-pad every layer's params to LANE width and stack.

    Returns:
      w_all: [L, 128, 128] bf16 (zero padded rows/cols),
      v_all: [L, 2, 128] f32 (gamma, beta) when DO_BATCH_NORM, else [L, 1, 128]
             f32 bias. The linear bias is NOT packed on the BN path — BN's mean
             subtraction cancels it exactly, so shipping it would be wasted DMA.
    """
    w_all = jnp.zeros((LAYERS_NUMBER, LANE, LANE), jnp.float32)
    if DO_BATCH_NORM:
        v_all = jnp.zeros((LAYERS_NUMBER, 2, LANE), jnp.float32)
    else:
        v_all = jnp.zeros((LAYERS_NUMBER, 1, LANE), jnp.float32)

    for l, (w, b, gamma, beta) in enumerate(raw):
        din, dout = w.shape
        w_all = w_all.at[l, :din, :dout].set(w)
        if DO_BATCH_NORM:
            v_all = v_all.at[l, 0, :dout].set(gamma)
            v_all = v_all.at[l, 1, :dout].set(beta)
        else:
            v_all = v_all.at[l, 0, :dout].set(b)

    # bf16 weights: halves the dominant weight DMA and the VMEM/vreg footprint;
    # the matmul still accumulates in f32 (preferred_element_type).
    return w_all.astype(jnp.bfloat16), v_all


# ---------------------------------------------------------------------------
# Pure-JAX reference (matches PyTorch forward semantics, f32 params)
# ---------------------------------------------------------------------------
def reference_forward(x, raw):
    for i, (w, b, gamma, beta) in enumerate(raw):
        y = x @ w + b
        if DO_BATCH_NORM:
            mean = jnp.mean(y, axis=0, keepdims=True)
            var = jnp.mean((y - mean) ** 2, axis=0, keepdims=True)
            y = (y - mean) / jnp.sqrt(var + BN_EPS)
            y = y * gamma + beta
        act = ACTIVATION_OUTPUT if i == len(raw) - 1 else ACTIVATION_HIDDEN
        if act == "relu":
            x = jnp.maximum(y, 0.0)
        elif act == "sigmoid":
            x = jax.nn.sigmoid(y)
        elif act == "tanh":
            x = jnp.tanh(y)
        else:
            x = y
    return x


if __name__ == "__main__":
    key = jax.random.PRNGKey(0)
    key, kx = jax.random.split(key)
    batch = 8
    x = jax.random.normal(kx, (batch, INPUT_SIZE), jnp.float32)

    raw_params = init_params(key)
    w_all, v_all = pack_params(raw_params)

    out = jax.block_until_ready(solution_model_forward(x, w_all, v_all))
    ref = reference_forward(x, raw_params)

    assert out.shape == (batch, OUTPUT_SIZE)
    # Tolerance covers bf16 weight/activation quantization on the MXU path
    # (sigmoid outputs in (0,1); observed deviation is at the few-1e-3 level).
    assert jnp.allclose(out, ref, atol=2e-2, rtol=2e-2), "mismatch vs reference"

    print("KERNEL_OK")
</pallas_src>

<mosaic_0001>
module attributes {stable_mosaic.version = 11 : i64} {
  func.func @fused_mlp_kernel(%arg0: memref<8x128xf32, #tpu.memory_space<vmem>>, %arg1: memref<3x128x128xbf16, #tpu.memory_space<vmem>>, %arg2: memref<3x2x128xf32, #tpu.memory_space<vmem>>, %arg3: memref<8x128xf32, #tpu.memory_space<vmem>>) attributes {dimension_semantics = [], scalar_prefetch = 0 : i64, scratch_operands = 0 : i64, tpu.core_type = #tpu.core_type<tc>} {
    %c0 = arith.constant 0 : index
    %c0_0 = arith.constant 0 : index
    %0 = vector.load %arg0[%c0, %c0_0] : memref<8x128xf32, #tpu.memory_space<vmem>>, vector<8x128xf32>
    %1 = arith.truncf %0 : vector<8x128xf32> to vector<8x128xbf16>
    %c0_1 = arith.constant 0 : index
    %c0_2 = arith.constant 0 : index
    %c0_3 = arith.constant 0 : index
    %2 = vector.load %arg1[%c0_1, %c0_2, %c0_3] : memref<3x128x128xbf16, #tpu.memory_space<vmem>>, vector<1x128x128xbf16>
    %3 = vector.shape_cast %2 : vector<1x128x128xbf16> to vector<128x128xbf16>
    %cst = arith.constant dense<0.000000e+00> : vector<8x128xf32>
    %4 = tpu.matmul %1, %3, %cst {dimension_numbers = #tpu.dot_dimension_numbers<[1], [0], [0], [1], [0, 0, 1, 1], [], []>} : vector<8x128xbf16>, vector<128x128xbf16>, vector<8x128xf32> -> vector<8x128xf32>
    %cst_4 = arith.constant dense<0.000000e+00> : vector<128xf32>
    %5 = vector.multi_reduction <add>, %4, %cst_4 [0] : vector<8x128xf32> to vector<128xf32>
    %6 = vector.shape_cast %5 : vector<128xf32> to vector<1x128xf32>
    %cst_5 = arith.constant 1.250000e-01 : f32
    %7 = vector.broadcast %cst_5 : f32 to vector<1x128xf32>
    %8 = arith.mulf %6, %7 : vector<1x128xf32>
    %9 = arith.mulf %4, %4 : vector<8x128xf32>
    %cst_6 = arith.constant dense<0.000000e+00> : vector<128xf32>
    %10 = vector.multi_reduction <add>, %9, %cst_6 [0] : vector<8x128xf32> to vector<128xf32>
    %11 = vector.shape_cast %10 : vector<128xf32> to vector<1x128xf32>
    %cst_7 = arith.constant 1.250000e-01 : f32
    %12 = vector.broadcast %cst_7 : f32 to vector<1x128xf32>
    %13 = arith.mulf %11, %12 : vector<1x128xf32>
    %14 = arith.mulf %8, %8 : vector<1x128xf32>
    %15 = arith.subf %13, %14 : vector<1x128xf32>
    %cst_8 = arith.constant 0.000000e+00 : f32
    %16 = vector.broadcast %cst_8 : f32 to vector<1x128xf32>
    %17 = arith.maximumf %15, %16 : vector<1x128xf32>
    %c0_9 = arith.constant 0 : index
    %c0_10 = arith.constant 0 : index
    %c0_11 = arith.constant 0 : index
    %18 = vector.load %arg2[%c0_9, %c0_10, %c0_11] : memref<3x2x128xf32, #tpu.memory_space<vmem>>, vector<1x1x128xf32>
    %19 = vector.shape_cast %18 : vector<1x1x128xf32> to vector<1x128xf32>
    %c0_12 = arith.constant 0 : index
    %c1 = arith.constant 1 : index
    %c0_13 = arith.constant 0 : index
    %20 = vector.load %arg2[%c0_12, %c1, %c0_13] : memref<3x2x128xf32, #tpu.memory_space<vmem>>, vector<1x1x128xf32>
    %21 = vector.shape_cast %20 : vector<1x1x128xf32> to vector<1x128xf32>
    %cst_14 = arith.constant 9.99999974E-6 : f32
    %22 = vector.broadcast %cst_14 : f32 to vector<1x128xf32>
    %23 = arith.addf %17, %22 : vector<1x128xf32>
    %24 = math.rsqrt %23 : vector<1x128xf32>
    %25 = arith.mulf %19, %24 : vector<1x128xf32>
    %26 = arith.mulf %8, %25 : vector<1x128xf32>
    %27 = arith.subf %21, %26 : vector<1x128xf32>
    %28 = vector.broadcast %25 : vector<1x128xf32> to vector<8x128xf32>
    %29 = arith.mulf %4, %28 : vector<8x128xf32>
    %30 = vector.broadcast %27 : vector<1x128xf32> to vector<8x128xf32>
    %31 = arith.addf %29, %30 : vector<8x128xf32>
    %cst_15 = arith.constant 0.000000e+00 : f32
    %32 = vector.broadcast %cst_15 : f32 to vector<8x128xf32>
    %33 = arith.maximumf %31, %32 : vector<8x128xf32>
    %34 = arith.truncf %33 : vector<8x128xf32> to vector<8x128xbf16>
    %c1_16 = arith.constant 1 : index
    %c0_17 = arith.constant 0 : index
    %c0_18 = arith.constant 0 : index
    %35 = vector.load %arg1[%c1_16, %c0_17, %c0_18] : memref<3x128x128xbf16, #tpu.memory_space<vmem>>, vector<1x128x128xbf16>
    %36 = vector.shape_cast %35 : vector<1x128x128xbf16> to vector<128x128xbf16>
    %cst_19 = arith.constant dense<0.000000e+00> : vector<8x128xf32>
    %37 = tpu.matmul %34, %36, %cst_19 {dimension_numbers = #tpu.dot_dimension_numbers<[1], [0], [0], [1], [0, 0, 1, 1], [], []>} : vector<8x128xbf16>, vector<128x128xbf16>, vector<8x128xf32> -> vector<8x128xf32>
    %cst_20 = arith.constant dense<0.000000e+00> : vector<128xf32>
    %38 = vector.multi_reduction <add>, %37, %cst_20 [0] : vector<8x128xf32> to vector<128xf32>
    %39 = vector.shape_cast %38 : vector<128xf32> to vector<1x128xf32>
    %cst_21 = arith.constant 1.250000e-01 : f32
    %40 = vector.broadcast %cst_21 : f32 to vector<1x128xf32>
    %41 = arith.mulf %39, %40 : vector<1x128xf32>
    %42 = arith.mulf %37, %37 : vector<8x128xf32>
    %cst_22 = arith.constant dense<0.000000e+00> : vector<128xf32>
    %43 = vector.multi_reduction <add>, %42, %cst_22 [0] : vector<8x128xf32> to vector<128xf32>
    %44 = vector.shape_cast %43 : vector<128xf32> to vector<1x128xf32>
    %cst_23 = arith.constant 1.250000e-01 : f32
    %45 = vector.broadcast %cst_23 : f32 to vector<1x128xf32>
    %46 = arith.mulf %44, %45 : vector<1x128xf32>
    %47 = arith.mulf %41, %41 : vector<1x128xf32>
    %48 = arith.subf %46, %47 : vector<1x128xf32>
    %cst_24 = arith.constant 0.000000e+00 : f32
    %49 = vector.broadcast %cst_24 : f32 to vector<1x128xf32>
    %50 = arith.maximumf %48, %49 : vector<1x128xf32>
    %c1_25 = arith.constant 1 : index
    %c0_26 = arith.constant 0 : index
    %c0_27 = arith.constant 0 : index
    %51 = vector.load %arg2[%c1_25, %c0_26, %c0_27] : memref<3x2x128xf32, #tpu.memory_space<vmem>>, vector<1x1x128xf32>
    %52 = vector.shape_cast %51 : vector<1x1x128xf32> to vector<1x128xf32>
    %c1_28 = arith.constant 1 : index
    %c1_29 = arith.constant 1 : index
    %c0_30 = arith.constant 0 : index
    %53 = vector.load %arg2[%c1_28, %c1_29, %c0_30] : memref<3x2x128xf32, #tpu.memory_space<vmem>>, vector<1x1x128xf32>
    %54 = vector.shape_cast %53 : vector<1x1x128xf32> to vector<1x128xf32>
    %cst_31 = arith.constant 9.99999974E-6 : f32
    %55 = vector.broadcast %cst_31 : f32 to vector<1x128xf32>
    %56 = arith.addf %50, %55 : vector<1x128xf32>
    %57 = math.rsqrt %56 : vector<1x128xf32>
    %58 = arith.mulf %52, %57 : vector<1x128xf32>
    %59 = arith.mulf %41, %58 : vector<1x128xf32>
    %60 = arith.subf %54, %59 : vector<1x128xf32>
    %61 = vector.broadcast %58 : vector<1x128xf32> to vector<8x128xf32>
    %62 = arith.mulf %37, %61 : vector<8x128xf32>
    %63 = vector.broadcast %60 : vector<1x128xf32> to vector<8x128xf32>
    %64 = arith.addf %62, %63 : vector<8x128xf32>
    %cst_32 = arith.constant 0.000000e+00 : f32
    %65 = vector.broadcast %cst_32 : f32 to vector<8x128xf32>
    %66 = arith.maximumf %64, %65 : vector<8x128xf32>
    %67 = arith.truncf %66 : vector<8x128xf32> to vector<8x128xbf16>
    %c2 = arith.constant 2 : index
    %c0_33 = arith.constant 0 : index
    %c0_34 = arith.constant 0 : index
    %68 = vector.load %arg1[%c2, %c0_33, %c0_34] : memref<3x128x128xbf16, #tpu.memory_space<vmem>>, vector<1x128x128xbf16>
    %69 = vector.shape_cast %68 : vector<1x128x128xbf16> to vector<128x128xbf16>
    %cst_35 = arith.constant dense<0.000000e+00> : vector<8x128xf32>
    %70 = tpu.matmul %67, %69, %cst_35 {dimension_numbers = #tpu.dot_dimension_numbers<[1], [0], [0], [1], [0, 0, 1, 1], [], []>} : vector<8x128xbf16>, vector<128x128xbf16>, vector<8x128xf32> -> vector<8x128xf32>
    %cst_36 = arith.constant dense<0.000000e+00> : vector<128xf32>
    %71 = vector.multi_reduction <add>, %70, %cst_36 [0] : vector<8x128xf32> to vector<128xf32>
    %72 = vector.shape_cast %71 : vector<128xf32> to vector<1x128xf32>
    %cst_37 = arith.constant 1.250000e-01 : f32
    %73 = vector.broadcast %cst_37 : f32 to vector<1x128xf32>
    %74 = arith.mulf %72, %73 : vector<1x128xf32>
    %75 = arith.mulf %70, %70 : vector<8x128xf32>
    %cst_38 = arith.constant dense<0.000000e+00> : vector<128xf32>
    %76 = vector.multi_reduction <add>, %75, %cst_38 [0] : vector<8x128xf32> to vector<128xf32>
    %77 = vector.shape_cast %76 : vector<128xf32> to vector<1x128xf32>
    %cst_39 = arith.constant 1.250000e-01 : f32
    %78 = vector.broadcast %cst_39 : f32 to vector<1x128xf32>
    %79 = arith.mulf %77, %78 : vector<1x128xf32>
    %80 = arith.mulf %74, %74 : vector<1x128xf32>
    %81 = arith.subf %79, %80 : vector<1x128xf32>
    %cst_40 = arith.constant 0.000000e+00 : f32
    %82 = vector.broadcast %cst_40 : f32 to vector<1x128xf32>
    %83 = arith.maximumf %81, %82 : vector<1x128xf32>
    %c2_41 = arith.constant 2 : index
    %c0_42 = arith.constant 0 : index
    %c0_43 = arith.constant 0 : index
    %84 = vector.load %arg2[%c2_41, %c0_42, %c0_43] : memref<3x2x128xf32, #tpu.memory_space<vmem>>, vector<1x1x128xf32>
    %85 = vector.shape_cast %84 : vector<1x1x128xf32> to vector<1x128xf32>
    %c2_44 = arith.constant 2 : index
    %c1_45 = arith.constant 1 : index
    %c0_46 = arith.constant 0 : index
    %86 = vector.load %arg2[%c2_44, %c1_45, %c0_46] : memref<3x2x128xf32, #tpu.memory_space<vmem>>, vector<1x1x128xf32>
    %87 = vector.shape_cast %86 : vector<1x1x128xf32> to vector<1x128xf32>
    %cst_47 = arith.constant 9.99999974E-6 : f32
    %88 = vector.broadcast %cst_47 : f32 to vector<1x128xf32>
    %89 = arith.addf %83, %88 : vector<1x128xf32>
    %90 = math.rsqrt %89 : vector<1x128xf32>
    %91 = arith.mulf %85, %90 : vector<1x128xf32>
    %92 = arith.mulf %74, %91 : vector<1x128xf32>
    %93 = arith.subf %87, %92 : vector<1x128xf32>
    %94 = vector.broadcast %91 : vector<1x128xf32> to vector<8x128xf32>
    %95 = arith.mulf %70, %94 : vector<8x128xf32>
    %96 = vector.broadcast %93 : vector<1x128xf32> to vector<8x128xf32>
    %97 = arith.addf %95, %96 : vector<8x128xf32>
    %cst_48 = arith.constant 0.000000e+00 : f32
    %98 = vector.broadcast %cst_48 : f32 to vector<8x128xf32>
    %99 = arith.subf %98, %97 : vector<8x128xf32>
    %100 = math.exp %99 : vector<8x128xf32>
    %cst_49 = arith.constant 1.000000e+00 : f32
    %101 = vector.broadcast %cst_49 : f32 to vector<8x128xf32>
    %102 = arith.addf %101, %100 : vector<8x128xf32>
    %cst_50 = arith.constant 1.000000e+00 : f32
    %103 = vector.broadcast %cst_50 : f32 to vector<8x128xf32>
    %104 = arith.divf %103, %102 : vector<8x128xf32>
    %c0_51 = arith.constant 0 : index
    %c0_52 = arith.constant 0 : index
    %105 = vector.load %arg3[%c0_51, %c0_52] : memref<8x128xf32, #tpu.memory_space<vmem>>, vector<8x128xf32>
    tpu.vector_store %arg3[%c0_51, %c0_52], %104 {strides = array<i32>} : memref<8x128xf32, #tpu.memory_space<vmem>>, vector<8x128xf32>,
    return
  }
}

</mosaic_0001>

<bundles_post_ra>
// kernel: solution_model_forward.1
= control target key start
LH: loop header
LB: loop body
LE: loop exit
PB: predicated region body
PF: predicated region fallthrough
CT: control target
= control target key end

     0   :  { %8 = vsyncpa [#allocation3], 0  ;;  %s664_s0 = inlined_call_operand.vmem [shape: f32[8,128], index: 0, kind: input, shape index: {}]   ;;  %s665_s1 = inlined_call_operand.hbm [shape: bf16[3,128,128], index: 1, kind: input, shape index: {}]   ;;  %s666_s2 = inlined_call_operand.vmem [shape: f32[3,2,128], index: 2, kind: input, shape index: {}]   ;;  %s667_s3 = inlined_call_operand.hbm [shape: f32[8,128], index: 3, kind: output, shape index: {}]  }
   0x1   :  { %9 = vsyncpa [#allocation4], 0  ;;  %s16_s14 = sshll.u32 %s665_s1, 4  ;;  %s613_s15 = smov [#allocation2]   ;;  %s17_s14 = int_to_ptr.hbm [resolvable:$true] %s16_s14 }
   0x2   :  { %s18_s16 = sshll.u32 %s613_s15, 4  ;;  %s614_s17 = smov 64   ;;  %s19_s16 = int_to_ptr.vmem [resolvable:$true] %s18_s16 }
   0x3   :  { %s615_s18 = smov 4  }
   0x4   :  { %24 = dma.hbm_to_vmem [thread:$0]  %s17_s14, 3072, %s19_s16, [#allocation3], %s614_s17, %s614_s17, %s615_s18  }
   0x5   :  { %609 = dma.done.wait [#allocation3], 3072  }
   0x6   :  { %610 = vsyncadd [#allocation3], 4294964224  ;;  %v530_v0 = vld [vmem:[#allocation2 + $0x38] sm:$0xff]  ;;  %v529_v1 = vld [vmem:[#allocation2 + $0x30] sm:$0xff]  ;;  %s413_s7 = sshll.u32 %s667_s3, 4  ;;  %s414_s7 = int_to_ptr.hbm [resolvable:$true] %s413_s7 }
   0x7   :  { %97 = vmatpush.bf16.msra.mxu0 %v530_v0  ;;  %v528_v2 = vld [vmem:[#allocation2 + $0x28] sm:$0xff]  ;;  %v527_v3 = vld [vmem:[#allocation2 + $0x20] sm:$0xff]  ;;  %v526_v4 = vld [vmem:[#allocation2 + $0x18] sm:$0xff] }
   0x8   :  { %v525_v5 = vld [vmem:[#allocation2 + $0x10] sm:$0xff]  ;;  %v524_v6 = vld [vmem:[#allocation2 + $0x8] sm:$0xff]  ;;  %v523_v7 = vld [vmem:[#allocation2] sm:$0xff] }
   0x9   :  { %v31_v8 = vld [vmem:[%s664_s0] sm:$0xff]  ;;  %v538_v10 = vld [vmem:[#allocation2 + $0x78] sm:$0xff]  ;;  %v537_v11 = vld [vmem:[#allocation2 + $0x70] sm:$0xff] }
   0xa   :  { %v32_v9 = vpack.c.bf16 %v31_v8, %v31_v8  ;;  %215 = vmatpush.bf16.msra.mxu1 %v538_v10  ;;  %v536_v12 = vld [vmem:[#allocation2 + $0x68] sm:$0xff]  ;;  %v535_v13 = vld [vmem:[#allocation2 + $0x60] sm:$0xff]  ;;  %v534_v14 = vld [vmem:[#allocation2 + $0x58] sm:$0xff] }
   0xb   :  { %98 = vmatpush.bf16.msra.mxu0 %v529_v1  ;;  %v533_v18 = vld [vmem:[#allocation2 + $0x50] sm:$0xff]  ;;  %v532_v23 = vld [vmem:[#allocation2 + $0x48] sm:$0xff]  ;;  %v531_v29 = vld [vmem:[#allocation2 + $0x40] sm:$0xff] }
   0xc   :  { %v128_v44 = vld [vmem:[%s666_s2] sm:$0x1]  ;;  %v129_v48 = vld [vmem:[%s666_s2 + $0x1] sm:$0x1]  ;;  %v546_v57 = vld [vmem:[#allocation2 + $0xb8] sm:$0xff] }
   0xd   :  { %334 = vmatpush.bf16.msra.mxu2 %v546_v57  ;;  %v545_v58 = vld [vmem:[#allocation2 + $0xb0] sm:$0xff]  ;;  %v544_v59 = vld [vmem:[#allocation2 + $0xa8] sm:$0xff]  ;;  %v543_v60 = vld [vmem:[#allocation2 + $0xa0] sm:$0xff] }
   0xe   :  { %216 = vmatpush.bf16.msra.mxu1 %v537_v11  ;;  %v542_v61 = vld [vmem:[#allocation2 + $0x98] sm:$0xff]  ;;  %v541_v1 = vld [vmem:[#allocation2 + $0x90] sm:$0xff] }
   0xf   :  { %99 = vmatpush.bf16.msra.mxu0 %v528_v2 }
  0x11   :  { %335 = vmatpush.bf16.msra.mxu2 %v545_v58 }
  0x12   :  { %217 = vmatpush.bf16.msra.mxu1 %v536_v12  ;;  %v539_v12 = vld [vmem:[#allocation2 + $0x80] sm:$0xff] }
  0x13   :  { %100 = vmatpush.bf16.msra.mxu0 %v527_v3 }
  0x15   :  { %336 = vmatpush.bf16.msra.mxu2 %v544_v59 }
  0x16   :  { %218 = vmatpush.bf16.msra.mxu1 %v535_v13 }
  0x17   :  { %101 = vmatpush.bf16.msra.mxu0 %v526_v4 }
  0x19   :  { %337 = vmatpush.bf16.msra.mxu2 %v543_v60 }
  0x1a   :  { %219 = vmatpush.bf16.msra.mxu1 %v534_v14 }
  0x1b   :  { %102 = vmatpush.bf16.msra.mxu0 %v525_v5 }
  0x1d   :  { %338 = vmatpush.bf16.msra.mxu2 %v542_v61 }
  0x1e   :  { %220 = vmatpush.bf16.msra.mxu1 %v533_v18 }
  0x1f   :  { %103 = vmatpush.bf16.msra.mxu0 %v524_v6  ;;  %v540_v6 = vld [vmem:[#allocation2 + $0x88] sm:$0xff] }
  0x21   :  { %339 = vmatpush.bf16.msra.mxu2 %v541_v1 }
  0x22   :  { %221 = vmatpush.bf16.msra.mxu1 %v532_v23 }
  0x23   :  { %104 = vmatpush.bf16.msra.mxu0 %v523_v7 }
  0x25   :  { %340 = vmatpush.bf16.msra.mxu2 %v540_v6  ;;  %v522_v6 = vld [vmem:[%s666_s2 + $0x5] sm:$0x1] }
  0x26   :  { %105 = vmatmul.bf16.vlgmr.msra.gmra.mxu0 %v32_v9  ;;  %222 = vmatpush.bf16.msra.mxu1 %v531_v29 }
  0x29   :  { %341 = vmatpush.bf16.msra.mxu2 %v539_v12 }
  0xa3   :  { %v106_v15 = vpop.f32.mrf.mxu0 }
  0xa4   :  { %v110_v16 = vrot.slane %v106_v15, 4  ;;  %v117_v17 = vmul.f32 %v106_v15, %v106_v15 }
  0xa6   :  { %v111_v19 = vadd.f32 %v110_v16, %v106_v15  ;;  %v118_v20 = vrot.slane %v117_v17, 4 }
  0xa8   :  { %v112_v21 = vrot.slane %v111_v19, 2  ;;  %v119_v22 = vadd.f32 %v118_v20, %v117_v17 }
  0xaa   :  { %v113_v24 = vadd.f32 %v112_v21, %v111_v19  ;;  %v120_v25 = vrot.slane %v119_v22, 2 }
  0xab   :  { %v108_v26 = vpop.f32.mrf.mxu0 }
  0xac   :  { %v114_v27 = vrot.slane %v113_v24, 1  ;;  %v121_v28 = vadd.f32 %v120_v25, %v119_v22 }
  0xae   :  { %v122_v30 = vrot.slane %v121_v28, 1  ;;  %v115_v31 = vadd.f32 %v114_v27, %v113_v24  ;;  %v487_v27 = vld [vmem:[%s666_s2 + $0x2] sm:$0x1] }
  0xb0   :  { %v123_v32 = vadd.f32 %v122_v30, %v121_v28  ;;  %v116_v33 = vmul.f32 0.125, %v115_v31  ;;  %v488_v31 = vld [vmem:[%s666_s2 + $0x3] sm:$0x1] }
  0xb2   :  { %v124_v34 = vmul.f32 0.125, %v123_v32  ;;  %v125_v35 = vmul.f32 %v116_v33, %v116_v33 }
  0xb4   :  { %v126_v36 = vsub.f32 %v124_v34, %v125_v35 }
  0xb6   :  { %v127_v37 = vmax.f32 %v126_v36, 0.0 }
  0xb8   :  { %v130_v38 = vadd.f32 1e-05, %v127_v37 }
  0xba   :  { %551 = vrsqrt.f32 %v130_v38  ;;  %vm137_vm1 = vweird.f32 %v130_v38 }
  0xc0   :  { %v552_v39 = vpop.eup %551 }
  0xc1   :  { %v132_v40 = vmul.f32 %v552_v39, %v130_v38  ;;  %vm138_vm0 = vweird.f32 %v552_v39 }
  0xc2   :  { %vm139_vm2 = vmor %vm137_vm1, %vm138_vm0 }
  0xc3   :  { %v133_v41 = vmul.f32 %v552_v39, %v132_v40 }
  0xc5   :  { %v134_v42 = vmul.f32 0.5, %v133_v41 }
  0xc7   :  { %v135_v43 = vsub.f32 1.5, %v134_v42 }
  0xc9   :  { %v136_v45 = vmul.f32 %v552_v39, %v135_v43 }
  0xcb   :  { %v140_v46 = vsel %vm139_vm2, %v552_v39, %v136_v45 }
  0xcc   :  { %v141_v47 = vmul.f32 %v140_v46, %v128_v44 }
  0xce   :  { %v142_v49 = vmul.f32 %v141_v47, %v116_v33  ;;  %v144_v50 = vperm.slane %v141_v47, 0 }
  0xd0   :  { %v143_v51 = vsub.f32 %v129_v48, %v142_v49  ;;  %v145_v52 = vmul.f32 %v144_v50, %v106_v15 }
  0xd2   :  { %v146_v53 = vperm.slane %v143_v51, 0 }
  0xd4   :  { %v147_v54 = vadd.f32 %v146_v53, %v145_v52 }
  0xd6   :  { %v148_v55 = vmax.f32 %v147_v54, 0.0 }
  0xd8   :  { %v149_v56 = vpack.c.bf16 %v148_v55, %v148_v55 }
  0xda   :  { %223 = vmatmul.bf16.vlgmr.msra.gmra.mxu1 %v149_v56 }
 0x157   :  { %v224_v62 = vpop.f32.mrf.mxu1 }
 0x158   :  { %v228_v63 = vrot.slane %v224_v62, 4  ;;  %v235_v0 = vmul.f32 %v224_v62, %v224_v62 }
 0x15a   :  { %v229_v2 = vadd.f32 %v228_v63, %v224_v62  ;;  %v236_v3 = vrot.slane %v235_v0, 4 }
 0x15c   :  { %v230_v4 = vrot.slane %v229_v2, 2  ;;  %v237_v5 = vadd.f32 %v236_v3, %v235_v0 }
 0x15e   :  { %v231_v7 = vadd.f32 %v230_v4, %v229_v2  ;;  %v238_v8 = vrot.slane %v237_v5, 2  ;;  %v521_v2 = vld [vmem:[%s666_s2 + $0x4] sm:$0x1]  ;;  %s616_s2 = smov [#allocation5]  }
 0x15f   :  { %v226_v9 = vpop.f32.mrf.mxu1  ;;  %s411_s4 = sshll.u32 %s616_s2, 4  ;;  %s412_s4 = int_to_ptr.vmem [resolvable:$true] %s411_s4 }
 0x160   :  { %v232_v10 = vrot.slane %v231_v7, 1  ;;  %v239_v11 = vadd.f32 %v238_v8, %v237_v5 }
 0x162   :  { %v240_v13 = vrot.slane %v239_v11, 1  ;;  %v233_v14 = vadd.f32 %v232_v10, %v231_v7 }
 0x164   :  { %v241_v15 = vadd.f32 %v240_v13, %v239_v11  ;;  %v234_v16 = vmul.f32 0.125, %v233_v14 }
 0x166   :  { %v242_v17 = vmul.f32 0.125, %v241_v15  ;;  %v243_v18 = vmul.f32 %v234_v16, %v234_v16 }
 0x168   :  { %v244_v19 = vsub.f32 %v242_v17, %v243_v18 }
 0x16a   :  { %v245_v20 = vmax.f32 %v244_v19, 0.0 }
 0x16c   :  { %v249_v21 = vadd.f32 1e-05, %v245_v20 }
 0x16e   :  { %553 = vrsqrt.f32 %v249_v21  ;;  %vm256_vm4 = vweird.f32 %v249_v21 }
 0x174   :  { %v554_v22 = vpop.eup %553 }
 0x175   :  { %v251_v23 = vmul.f32 %v554_v22, %v249_v21  ;;  %vm257_vm3 = vweird.f32 %v554_v22 }
 0x176   :  { %vm258_vm5 = vmor %vm256_vm4, %vm257_vm3 }
 0x177   :  { %v252_v24 = vmul.f32 %v554_v22, %v251_v23 }
 0x179   :  { %v253_v25 = vmul.f32 0.5, %v252_v24 }
 0x17b   :  { %v254_v26 = vsub.f32 1.5, %v253_v25 }
 0x17d   :  { %v255_v28 = vmul.f32 %v554_v22, %v254_v26 }
 0x17f   :  { %v259_v29 = vsel %vm258_vm5, %v554_v22, %v255_v28 }
 0x180   :  { %v260_v30 = vmul.f32 %v487_v27, %v259_v29 }
 0x182   :  { %v261_v32 = vmul.f32 %v260_v30, %v234_v16  ;;  %v263_v33 = vperm.slane %v260_v30, 0 }
 0x184   :  { %v262_v34 = vsub.f32 %v488_v31, %v261_v32  ;;  %v264_v35 = vmul.f32 %v263_v33, %v224_v62 }
 0x186   :  { %v265_v36 = vperm.slane %v262_v34, 0 }
 0x188   :  { %v266_v37 = vadd.f32 %v265_v36, %v264_v35 }
 0x18a   :  { %v267_v38 = vmax.f32 %v266_v37, 0.0 }
 0x18c   :  { %v268_v39 = vpack.c.bf16 %v267_v38, %v267_v38 }
 0x18e   :  { %342 = vmatmul.bf16.vlgmr.msra.gmra.mxu2 %v268_v39 }
 0x211   :  { %v343_v40 = vpop.f32.mrf.mxu2 }
 0x212   :  { %v347_v41 = vrot.slane %v343_v40, 4  ;;  %v354_v42 = vmul.f32 %v343_v40, %v343_v40 }
 0x214   :  { %v348_v43 = vadd.f32 %v347_v41, %v343_v40  ;;  %v355_v44 = vrot.slane %v354_v42, 4 }
 0x216   :  { %v349_v45 = vrot.slane %v348_v43, 2  ;;  %v356_v46 = vadd.f32 %v355_v44, %v354_v42 }
 0x218   :  { %v350_v47 = vadd.f32 %v349_v45, %v348_v43  ;;  %v357_v48 = vrot.slane %v356_v46, 2 }
 0x219   :  { %v345_v49 = vpop.f32.mrf.mxu2 }
 0x21a   :  { %v351_v50 = vrot.slane %v350_v47, 1  ;;  %v358_v51 = vadd.f32 %v357_v48, %v356_v46 }
 0x21c   :  { %v352_v52 = vadd.f32 %v351_v50, %v350_v47  ;;  %v359_v53 = vrot.slane %v358_v51, 1 }
 0x21e   :  { %v353_v54 = vmul.f32 0.125, %v352_v52  ;;  %v360_v55 = vadd.f32 %v359_v53, %v358_v51 }
 0x220   :  { %v361_v56 = vmul.f32 0.125, %v360_v55  ;;  %v362_v57 = vmul.f32 %v353_v54, %v353_v54 }
 0x222   :  { %v363_v58 = vsub.f32 %v361_v56, %v362_v57 }
 0x224   :  { %v364_v59 = vmax.f32 %v363_v58, 0.0 }
 0x226   :  { %v368_v60 = vadd.f32 1e-05, %v364_v59 }
 0x228   :  { %555 = vrsqrt.f32 %v368_v60  ;;  %vm375_vm7 = vweird.f32 %v368_v60 }
 0x22e   :  { %v556_v61 = vpop.eup %555 }
 0x22f   :  { %v370_v62 = vmul.f32 %v556_v61, %v368_v60  ;;  %vm376_vm6 = vweird.f32 %v556_v61 }
 0x230   :  { %vm377_vm8 = vmor %vm375_vm7, %vm376_vm6 }
 0x231   :  { %v371_v63 = vmul.f32 %v556_v61, %v370_v62 }
 0x233   :  { %v372_v0 = vmul.f32 0.5, %v371_v63 }
 0x235   :  { %v373_v1 = vsub.f32 1.5, %v372_v0 }
 0x237   :  { %v374_v3 = vmul.f32 %v556_v61, %v373_v1 }
 0x239   :  { %v378_v4 = vsel %vm377_vm8, %v556_v61, %v374_v3 }
 0x23a   :  { %v379_v5 = vmul.f32 %v521_v2, %v378_v4 }
 0x23c   :  { %v380_v7 = vmul.f32 %v379_v5, %v353_v54  ;;  %v382_v8 = vperm.slane %v379_v5, 0 }
 0x23e   :  { %v381_v9 = vsub.f32 %v522_v6, %v380_v7  ;;  %v383_v10 = vmul.f32 %v382_v8, %v343_v40 }
 0x240   :  { %v384_v11 = vperm.slane %v381_v9, 0 }
 0x242   :  { %v385_v12 = vadd.f32 %v384_v11, %v383_v10 }
 0x244   :  { %v386_v13 = vsub.f32 0.0, %v385_v12 }
 0x246   :  { %v387_v14 = vmul.f32 1.442695, %v386_v13 }
 0x248   :  { %557 = vpow2.f32 %v387_v14 }
 0x24e   :  { %v558_v15 = vpop.eup %557 }
 0x24f   :  { %v389_v16 = vadd.f32 1.0, %v558_v15 }
 0x251   :  { %559 = vrcp.f32 %v389_v16  ;;  %v401_v20 = vand.u32 2147483648, %v389_v16  ;;  %v399_v22 = vand.u32 2147483647, %v389_v16  ;;  %vm395_vm10 = vweird.f32 %v389_v16 }
 0x253   :  { %v402_v24 = vor.u32 1.1754944e-38, %v401_v20  ;;  %vm400_vm12 = vcmp.eq.f32.partialorder %v399_v22, 8.507059e+37 }
 0x257   :  { %v560_v17 = vpop.eup %559 }
 0x258   :  { %v391_v18 = vmul.f32 %v560_v17, %v389_v16  ;;  %vm396_vm9 = vweird.f32 %v560_v17 }
 0x259   :  { %vm397_vm11 = vmor %vm395_vm10, %vm396_vm9 }
 0x25a   :  { %v392_v19 = vsub.f32 1.0, %v391_v18 }
 0x25c   :  { %v393_v21 = vmul.f32 %v560_v17, %v392_v19 }
 0x25e   :  { %v394_v23 = vadd.f32 %v560_v17, %v393_v21 }
 0x260   :  { %v398_v25 = vsel %vm397_vm11, %v560_v17, %v394_v23 }
 0x261   :  { %v403_v26 = vsel %vm400_vm12, %v402_v24, %v398_v25 }
 0x262   :  { %405 = vst [vmem:[#allocation5] sm:$0xff] %v403_v26 }
 0x263   :  { %416 = dma.vmem_to_hbm [thread:$0]  %s412_s4, 128, %s414_s7, [#allocation4]  }
 0x264   :  { %611 = dma.done.wait [#allocation4], 128  }
 0x265   :  { %612 = vsyncadd [#allocation4], 4294967168 }
 0x266   :  { %421 = vsyncpa [#allocation3], 1 }
 0x267   :  { %422 = vsyncpa [#allocation4], 1 }

</bundles_post_ra>
